<compile_context>
chip_gen: v5e
topology: v5e:2x2
jax: 0.10.0
libtpu: 0.0.40
codegen_flags: <defaults>
</compile_context>

<pallas_src>
import functools

import jax
import jax.numpy as jnp
from jax.experimental import pallas as pl
from jax.experimental.pallas import tpu as pltpu


def _round_up(n, m):
    return ((n + m - 1) // m) * m


def _mlp_kernel(params_ref, x_ref, o_ref, *, in_f, h1, out_f):
    """One grid step over a dense (rows, lanes) slab of the batch.

    params_ref : SMEM (h1*in_f + h1 + out_f*h1 + out_f,) f32, packed
                 [w1 (h1,in_f) row-major | b1 (h1,) | w2 (out_f,h1) row-major | b2 (out_f,)]
    x_ref      : VMEM (in_f, rows, lanes)   -- batch dense on sublane x lane axes
    o_ref      : VMEM (out_f, rows, lanes)
    """
    w1_off = 0
    b1_off = w1_off + h1 * in_f
    w2_off = b1_off + h1
    b2_off = w2_off + out_f * h1

    # Hoist the per-feature input slabs (each a dense (rows, lanes) tile).
    xs = [x_ref[k] for k in range(in_f)]

    # Fully unrolled over the tiny hidden/output dims: scalar(SMEM) x vector FMAs
    # on the VPU. No MXU, no XLU reduce.
    acc = [None] * out_f
    for h in range(h1):
        z = xs[0] * params_ref[w1_off + h * in_f + 0]
        for k in range(1, in_f):
            z = z + xs[k] * params_ref[w1_off + h * in_f + k]
        z = z + params_ref[b1_off + h]
        p = jnp.maximum(z, 0.0)  # ReLU
        for o in range(out_f):
            t = p * params_ref[w2_off + o * h1 + h]
            acc[o] = t if acc[o] is None else acc[o] + t

    for o in range(out_f):
        o_ref[o] = (acc[o] + params_ref[b2_off + o]).astype(o_ref.dtype)


def _pallas_forward(x_fm, packed_params, *, in_f, h1, out_f, B, block_batch, lanes):
    """x_fm: (in_f, B) feature-major activations. Returns (out_f, B)."""
    # Lane width: multiple of 128, never wider than the (rounded-up) batch.
    lanes = max(128, (min(lanes, _round_up(B, 128)) // 128) * 128)
    S = pl.cdiv(B, lanes)                       # batch sublane-rows
    rows_target = max(1, block_batch // lanes)  # rows per grid step (~block_batch elems)

    if S <= 8:
        rows, n_blocks = S, 1                   # single full-extent block (tiny batches)
    else:
        # At least 8 rows (sublane multiple), at most ~half of S so the ("parallel",)
        # grid has >= 2 steps and v7x's two TensorCores both get work.
        rows = min(max(8, (rows_target // 8) * 8), _round_up(pl.cdiv(S, 2), 8))
        n_blocks = pl.cdiv(S, rows)
    S_pad = n_blocks * rows
    B_pad = S_pad * lanes

    if B_pad != B:
        # Ragged-tail padding only. For best perf feed batch sizes that are a
        # multiple of `lanes` (then this is a free reshape, no extra HBM pass).
        x_fm = jnp.pad(x_fm, ((0, 0), (0, B_pad - B)))
    x3 = x_fm.reshape(in_f, S_pad, lanes)

    kernel = functools.partial(_mlp_kernel, in_f=in_f, h1=h1, out_f=out_f)

    out3 = pl.pallas_call(
        kernel,
        out_shape=jax.ShapeDtypeStruct((out_f, S_pad, lanes), jnp.float32),
        grid_spec=pltpu.PrefetchScalarGridSpec(
            num_scalar_prefetch=0,
            grid=(n_blocks,),
            in_specs=[
                # 17 weight/bias scalars live in SMEM for the whole call.
                pl.BlockSpec(memory_space=pltpu.MemorySpace.SMEM),
                # Activations: dense (rows, lanes) batch slabs, double-buffered.
                pl.BlockSpec((in_f, rows, lanes), lambda i: (0, i, 0)),
            ],
            out_specs=pl.BlockSpec((out_f, rows, lanes), lambda i: (0, i, 0)),
        ),
        compiler_params=pltpu.CompilerParams(
            dimension_semantics=("parallel",),  # batch tiles shard across v7x's 2 TCs
        ),
    )(packed_params, x3)

    return out3.reshape(out_f, B_pad)[:, :B]    # (out_f, B)


def _fused_jnp_forward(x_fm, w1, b1, w2, b2):
    z1 = w1 @ x_fm + b1[:, None]
    p1 = jnp.maximum(z1, 0.0)
    return w2 @ p1 + b2[:, None]                # (out_f, B)


def net_class1_forward(x, params, *, block_batch=16384, lanes=512,
                       feature_major_in=False, feature_major_out=False,
                       use_pallas=None):
    """Forward pass of net_class1 (BN_model=None, act_fun=relu).

    x: (B, in_features) float32 (PyTorch layout), or (in_features, B) when
       feature_major_in=True (preferred for large B: skips the transpose pass).
    params (torch nn.Linear layouts):
       w1 (n_hidden, in_features), b1 (n_hidden,),
       w2 (out_features, n_hidden), b2 (out_features,)
    Returns (B, out_features), or (out_features, B) if feature_major_out=True.
    """
    w1, b1, w2, b2 = params["w1"], params["b1"], params["w2"], params["b2"]
    h1, in_f = w1.shape
    out_f = w2.shape[0]

    if feature_major_in:
        B = x.shape[1]
        x_fm = x
    else:
        B = x.shape[0]
        x_fm = x.T  # one extra HBM pass; pass feature-major data upstream to avoid it

    if use_pallas is None:
        use_pallas = B >= 4096  # tiny batches: launch overhead dominates, fused XLA wins

    if use_pallas:
        packed = jnp.concatenate(
            [w1.reshape(-1), b1.reshape(-1), w2.reshape(-1), b2.reshape(-1)]
        ).astype(jnp.float32)
        out_fm = _pallas_forward(x_fm.astype(jnp.float32), packed,
                                 in_f=in_f, h1=h1, out_f=out_f, B=B,
                                 block_batch=block_batch, lanes=lanes)
    else:
        out_fm = _fused_jnp_forward(x_fm, w1, b1, w2, b2)

    return out_fm if feature_major_out else out_fm.T


def init_params(key, in_features=2, n_hidden=4, out_features=1):
    """Deterministic init mimicking torch.nn.Linear default (U(+/- 1/sqrt(fan_in)))."""
    ks = jax.random.split(key, 4)
    bound1 = 1.0 / (in_features ** 0.5)
    bound2 = 1.0 / (n_hidden ** 0.5)
    return {
        "w1": jax.random.uniform(ks[0], (n_hidden, in_features), jnp.float32, -bound1, bound1),
        "b1": jax.random.uniform(ks[1], (n_hidden,), jnp.float32, -bound1, bound1),
        "w2": jax.random.uniform(ks[2], (out_features, n_hidden), jnp.float32, -bound2, bound2),
        "b2": jax.random.uniform(ks[3], (out_features,), jnp.float32, -bound2, bound2),
    }


def reference_forward(x, p):
    z1 = x @ p["w1"].T + p["b1"]
    p1 = jnp.maximum(z1, 0.0)
    return p1 @ p["w2"].T + p["b2"]


if __name__ == "__main__":
    key = jax.random.PRNGKey(0)
    k_x, k_p = jax.random.split(key)

    in_features, n_hidden, out_features = 2, 4, 1
    params = init_params(k_p, in_features, n_hidden, out_features)

    # Small demo batch (forces the Pallas path so the kernel is exercised).
    B = 256
    x = jax.random.normal(k_x, (B, in_features), jnp.float32)
    out = jax.block_until_ready(net_class1_forward(x, params, use_pallas=True))
    ref = reference_forward(x, params)
    assert out.shape == (B, out_features), out.shape
    assert jnp.allclose(out, ref, atol=1e-5, rtol=1e-5)

    # Ragged batch exercises the tail-padding path.
    x_rag = jax.random.normal(k_x, (200, in_features), jnp.float32)
    out_rag = jax.block_until_ready(net_class1_forward(x_rag, params, use_pallas=True))
    assert out_rag.shape == (200, out_features)
    assert jnp.allclose(out_rag, reference_forward(x_rag, params), atol=1e-5, rtol=1e-5)

    # Larger batch -> multi-step ("parallel",) grid (>=2 tiles, both TCs on v7x),
    # also exercised through the transpose-free feature-major input path.
    x_big = jax.random.normal(k_x, (8192, in_features), jnp.float32)
    out_big = jax.block_until_ready(
        net_class1_forward(x_big.T, params, feature_major_in=True, use_pallas=True))
    assert out_big.shape == (8192, out_features)
    assert jnp.allclose(out_big, reference_forward(x_big, params), atol=1e-5, rtol=1e-5)

    print("KERNEL_OK")
</pallas_src>

<mosaic_0001>
module attributes {stable_mosaic.version = 11 : i64} {
  func.func @_mlp_kernel(%arg0: i32, %arg1: memref<17xf32, #tpu.memory_space<smem>>, %arg2: memref<2x1x256xf32, #tpu.memory_space<vmem>>, %arg3: memref<1x1x256xf32, #tpu.memory_space<vmem>>) attributes {dimension_semantics = [#tpu.dimension_semantics<parallel>], iteration_bounds = array<i64: 1>, scalar_prefetch = 0 : i64, scratch_operands = 0 : i64, tpu.core_type = #tpu.core_type<tc>, window_params = [{transform_indices = @transform_0, window_bounds = array<i64: 17>}, {transform_indices = @transform_1, window_bounds = array<i64: 2, 1, 256>}, {transform_indices = @transform_2, window_bounds = array<i64: 1, 1, 256>}]} {
    %c0 = arith.constant 0 : index
    %c0_0 = arith.constant 0 : index
    %c0_1 = arith.constant 0 : index
    %0 = vector.load %arg2[%c0, %c0_0, %c0_1] : memref<2x1x256xf32, #tpu.memory_space<vmem>>, vector<1x1x256xf32>
    %1 = vector.shape_cast %0 : vector<1x1x256xf32> to vector<1x256xf32>
    %c1 = arith.constant 1 : index
    %c0_2 = arith.constant 0 : index
    %c0_3 = arith.constant 0 : index
    %2 = vector.load %arg2[%c1, %c0_2, %c0_3] : memref<2x1x256xf32, #tpu.memory_space<vmem>>, vector<1x1x256xf32>
    %3 = vector.shape_cast %2 : vector<1x1x256xf32> to vector<1x256xf32>
    %c0_4 = arith.constant 0 : index
    %4 = memref.load %arg1[%c0_4] : memref<17xf32, #tpu.memory_space<smem>>
    %5 = vector.broadcast %4 : f32 to vector<1x256xf32>
    %6 = arith.mulf %1, %5 : vector<1x256xf32>
    %c1_5 = arith.constant 1 : index
    %7 = memref.load %arg1[%c1_5] : memref<17xf32, #tpu.memory_space<smem>>
    %8 = vector.broadcast %7 : f32 to vector<1x256xf32>
    %9 = arith.mulf %3, %8 : vector<1x256xf32>
    %10 = arith.addf %6, %9 : vector<1x256xf32>
    %c8 = arith.constant 8 : index
    %11 = memref.load %arg1[%c8] : memref<17xf32, #tpu.memory_space<smem>>
    %12 = vector.broadcast %11 : f32 to vector<1x256xf32>
    %13 = arith.addf %10, %12 : vector<1x256xf32>
    %cst = arith.constant 0.000000e+00 : f32
    %14 = vector.broadcast %cst : f32 to vector<1x256xf32>
    %15 = arith.maximumf %13, %14 : vector<1x256xf32>
    %c12 = arith.constant 12 : index
    %16 = memref.load %arg1[%c12] : memref<17xf32, #tpu.memory_space<smem>>
    %17 = vector.broadcast %16 : f32 to vector<1x256xf32>
    %18 = arith.mulf %15, %17 : vector<1x256xf32>
    %c2 = arith.constant 2 : index
    %19 = memref.load %arg1[%c2] : memref<17xf32, #tpu.memory_space<smem>>
    %20 = vector.broadcast %19 : f32 to vector<1x256xf32>
    %21 = arith.mulf %1, %20 : vector<1x256xf32>
    %c3 = arith.constant 3 : index
    %22 = memref.load %arg1[%c3] : memref<17xf32, #tpu.memory_space<smem>>
    %23 = vector.broadcast %22 : f32 to vector<1x256xf32>
    %24 = arith.mulf %3, %23 : vector<1x256xf32>
    %25 = arith.addf %21, %24 : vector<1x256xf32>
    %c9 = arith.constant 9 : index
    %26 = memref.load %arg1[%c9] : memref<17xf32, #tpu.memory_space<smem>>
    %27 = vector.broadcast %26 : f32 to vector<1x256xf32>
    %28 = arith.addf %25, %27 : vector<1x256xf32>
    %cst_6 = arith.constant 0.000000e+00 : f32
    %29 = vector.broadcast %cst_6 : f32 to vector<1x256xf32>
    %30 = arith.maximumf %28, %29 : vector<1x256xf32>
    %c13 = arith.constant 13 : index
    %31 = memref.load %arg1[%c13] : memref<17xf32, #tpu.memory_space<smem>>
    %32 = vector.broadcast %31 : f32 to vector<1x256xf32>
    %33 = arith.mulf %30, %32 : vector<1x256xf32>
    %34 = arith.addf %18, %33 : vector<1x256xf32>
    %c4 = arith.constant 4 : index
    %35 = memref.load %arg1[%c4] : memref<17xf32, #tpu.memory_space<smem>>
    %36 = vector.broadcast %35 : f32 to vector<1x256xf32>
    %37 = arith.mulf %1, %36 : vector<1x256xf32>
    %c5 = arith.constant 5 : index
    %38 = memref.load %arg1[%c5] : memref<17xf32, #tpu.memory_space<smem>>
    %39 = vector.broadcast %38 : f32 to vector<1x256xf32>
    %40 = arith.mulf %3, %39 : vector<1x256xf32>
    %41 = arith.addf %37, %40 : vector<1x256xf32>
    %c10 = arith.constant 10 : index
    %42 = memref.load %arg1[%c10] : memref<17xf32, #tpu.memory_space<smem>>
    %43 = vector.broadcast %42 : f32 to vector<1x256xf32>
    %44 = arith.addf %41, %43 : vector<1x256xf32>
    %cst_7 = arith.constant 0.000000e+00 : f32
    %45 = vector.broadcast %cst_7 : f32 to vector<1x256xf32>
    %46 = arith.maximumf %44, %45 : vector<1x256xf32>
    %c14 = arith.constant 14 : index
    %47 = memref.load %arg1[%c14] : memref<17xf32, #tpu.memory_space<smem>>
    %48 = vector.broadcast %47 : f32 to vector<1x256xf32>
    %49 = arith.mulf %46, %48 : vector<1x256xf32>
    %50 = arith.addf %34, %49 : vector<1x256xf32>
    %c6 = arith.constant 6 : index
    %51 = memref.load %arg1[%c6] : memref<17xf32, #tpu.memory_space<smem>>
    %52 = vector.broadcast %51 : f32 to vector<1x256xf32>
    %53 = arith.mulf %1, %52 : vector<1x256xf32>
    %c7 = arith.constant 7 : index
    %54 = memref.load %arg1[%c7] : memref<17xf32, #tpu.memory_space<smem>>
    %55 = vector.broadcast %54 : f32 to vector<1x256xf32>
    %56 = arith.mulf %3, %55 : vector<1x256xf32>
    %57 = arith.addf %53, %56 : vector<1x256xf32>
    %c11 = arith.constant 11 : index
    %58 = memref.load %arg1[%c11] : memref<17xf32, #tpu.memory_space<smem>>
    %59 = vector.broadcast %58 : f32 to vector<1x256xf32>
    %60 = arith.addf %57, %59 : vector<1x256xf32>
    %cst_8 = arith.constant 0.000000e+00 : f32
    %61 = vector.broadcast %cst_8 : f32 to vector<1x256xf32>
    %62 = arith.maximumf %60, %61 : vector<1x256xf32>
    %c15 = arith.constant 15 : index
    %63 = memref.load %arg1[%c15] : memref<17xf32, #tpu.memory_space<smem>>
    %64 = vector.broadcast %63 : f32 to vector<1x256xf32>
    %65 = arith.mulf %62, %64 : vector<1x256xf32>
    %66 = arith.addf %50, %65 : vector<1x256xf32>
    %c16 = arith.constant 16 : index
    %67 = memref.load %arg1[%c16] : memref<17xf32, #tpu.memory_space<smem>>
    %68 = vector.broadcast %67 : f32 to vector<1x256xf32>
    %69 = arith.addf %66, %68 : vector<1x256xf32>
    %c0_9 = arith.constant 0 : index
    %c0_10 = arith.constant 0 : index
    %c0_11 = arith.constant 0 : index
    %70 = vector.load %arg3[%c0_9, %c0_10, %c0_11] : memref<1x1x256xf32, #tpu.memory_space<vmem>>, vector<1x1x256xf32>
    %71 = vector.shape_cast %70 : vector<1x1x256xf32> to vector<1x256xf32>
    %72 = vector.shape_cast %69 : vector<1x256xf32> to vector<1x1x256xf32>
    tpu.vector_store %arg3[%c0_9, %c0_10, %c0_11], %72 {strides = array<i32>} : memref<1x1x256xf32, #tpu.memory_space<vmem>>, vector<1x1x256xf32>,
    return
  }
  func.func @transform_0(%arg0: i32) -> i32 {
    %c0_i32 = arith.constant 0 : i32
    %c0_i32_0 = arith.constant 0 : i32
    return %c0_i32 : i32
  }
  func.func @transform_1(%arg0: i32) -> (i32, i32, i32) {
    %c0_i32 = arith.constant 0 : i32
    %c0_i32_0 = arith.constant 0 : i32
    %c0_i32_1 = arith.constant 0 : i32
    return %c0_i32, %arg0, %c0_i32_0 : i32, i32, i32
  }
  func.func @transform_2(%arg0: i32) -> (i32, i32, i32) {
    %c0_i32 = arith.constant 0 : i32
    %c0_i32_0 = arith.constant 0 : i32
    %c0_i32_1 = arith.constant 0 : i32
    return %c0_i32, %arg0, %c0_i32_0 : i32, i32, i32
  }
}

</mosaic_0001>

<bundles_post_ra>
// kernel: tpu_custom_call.1
= control target key start
LH: loop header
LB: loop body
LE: loop exit
PB: predicated region body
PF: predicated region fallthrough
CT: control target
= control target key end

     0   :  { %7 = vsyncpa [#allocation5], 0  ;;  %s254_s0 = inlined_call_operand.hbm [shape: f32[17], index: 0, kind: input, shape index: {}]   ;;  %s255_s1 = inlined_call_operand.hbm [shape: f32[2,1,256], index: 1, kind: input, shape index: {}]   ;;  %s256_s2 = inlined_call_operand.hbm [shape: f32[1,1,256], index: 2, kind: output, shape index: {}]  }
   0x1   :  { %8 = vsyncpa [#allocation3], 0 }
   0x2   :  { %9 = vsyncpa [#allocation4], 0  ;;  %s15_s11 = sshll.u32 %s254_s0, 4  ;;  %s23_s14 = sshll.u32 %s255_s1, 4  ;;  %s16_s11 = int_to_ptr.hbm [resolvable:$true] %s15_s11  ;;  %s24_s14 = int_to_ptr.hbm [resolvable:$true] %s23_s14 }
   0x3   :  { %s216_s15 = smov [#allocation2]   ;;  %s217_s16 = smov [#allocation6]  }
   0x4   :  { %18 = dma.hbm_to_smem %s16_s11, 16, %s216_s15, [#allocation5]  }
   0x5   :  { %s25_s17 = sshll.u32 %s217_s16, 4  ;;  %s218_s18 = smov 32   ;;  %s26_s17 = int_to_ptr.vmem [resolvable:$true] %s25_s17 }
   0x6   :  { %s219_s19 = smov 2  }
   0x7   :  { %31 = dma.hbm_to_vmem [thread:$0]  %s24_s14, 64, %s26_s17, [#allocation3], %s218_s18, %s218_s18, %s219_s19  }
   0x8   :  { %210 = dma.done.wait [#allocation5], 16  }
   0x9   :  { %211 = vsyncadd [#allocation5], 4294967280 }
   0xa   :  { %212 = dma.done.wait [#allocation3], 64  }
   0xb   :  { %213 = vsyncadd [#allocation3], 4294967232 }
   0xc   :  { %40 = sfence }
   0xd   :  { %s44_s0 = sld [smem:[#allocation2]]  ;;  %v41_v0 = vld [vmem:[#allocation6] sm:$0x3]  ;;  %v43_v1 = vld [vmem:[#allocation6 + $0x2] sm:$0x3]  ;;  %v106_v43 = vlaneseq  ;;  %s220_s7 = smov [#allocation7]  }
   0xe   :  { %s129_s20 = sld [smem:[#allocation2 + $0x1]]  ;;  %s116_s8 = sshll.u32 %s220_s7, 4  ;;  %s117_s8 = int_to_ptr.vmem [resolvable:$true] %s116_s8 }
   0xf   :  { %s130_s21 = sld [smem:[#allocation2 + $0x8]]  ;;  %s118_s11 = sshll.u32 %s256_s2, 4  ;;  %vm108_vm0 = vcmp.lt.s32.totalorder %v106_v43, 256  ;;  %s119_s11 = int_to_ptr.hbm [resolvable:$true] %s118_s11 }
  0x10   :  { %s242_s22 = sld [smem:[#allocation2 + $0xc]] }
  0x11   :  { %s132_s1 = sld [smem:[#allocation2 + $0x2]] }
  0x12   :  { %s133_s23 = sld [smem:[#allocation2 + $0x3]] }
  0x13   :  { %v45_v2 = vstv %s44_s0  ;;  %s134_s24 = sld [smem:[#allocation2 + $0x9]] }
  0x14   :  { %v46_v3 = vmul.f32 %v45_v2, %v41_v0  ;;  %v48_v4 = vstv %s129_s20  ;;  %s244_s25 = sld [smem:[#allocation2 + $0xd]] }
  0x15   :  { %v49_v5 = vmul.f32 %v48_v4, %v43_v1  ;;  %s136_s26 = sld [smem:[#allocation2 + $0x4]]  ;;  %v52_v6 = vstv %s130_s21 }
  0x16   :  { %s137_s27 = sld [smem:[#allocation2 + $0x5]]  ;;  %v56_v17 = vstv %s242_s22 }
  0x17   :  { %v50_v7 = vadd.f32 %v49_v5, %v46_v3  ;;  %v59_v8 = vstv %s132_s1  ;;  %s138_s28 = sld [smem:[#allocation2 + $0xa]] }
  0x18   :  { %v60_v9 = vmul.f32 %v59_v8, %v41_v0  ;;  %v62_v10 = vstv %s133_s23  ;;  %s246_s29 = sld [smem:[#allocation2 + $0xe]] }
  0x19   :  { %v53_v11 = vadd.f32 %v52_v6, %v50_v7  ;;  %v63_v12 = vmul.f32 %v62_v10, %v43_v1  ;;  %s140_s30 = sld [smem:[#allocation2 + $0x6]]  ;;  %v66_v13 = vstv %s134_s24 }
  0x1a   :  { %s141_s3 = sld [smem:[#allocation2 + $0x7]]  ;;  %v70_v22 = vstv %s244_s25 }
  0x1b   :  { %v54_v14 = vmax.f32 %v53_v11, 0.0  ;;  %v64_v15 = vadd.f32 %v63_v12, %v60_v9  ;;  %v74_v16 = vstv %s136_s26  ;;  %s142_s4 = sld [smem:[#allocation2 + $0xb]] }
  0x1c   :  { %v75_v18 = vmul.f32 %v74_v16, %v41_v0  ;;  %v77_v19 = vstv %s137_s27  ;;  %s143_s5 = sld [smem:[#allocation2 + $0xf]] }
  0x1d   :  { %v67_v20 = vadd.f32 %v66_v13, %v64_v15  ;;  %v78_v21 = vmul.f32 %v77_v19, %v43_v1  ;;  %v81_v23 = vstv %s138_s28  ;;  %v57_v24 = vmul.f32 %v56_v17, %v54_v14  ;;  %s144_s6 = sld [smem:[#allocation2 + $0x10]] }
  0x1e   :  { %v85_v33 = vstv %s246_s29 }
  0x1f   :  { %v68_v25 = vmax.f32 %v67_v20, 0.0  ;;  %v79_v26 = vadd.f32 %v78_v21, %v75_v18  ;;  %v89_v27 = vstv %s140_s30 }
  0x20   :  { %v90_v28 = vmul.f32 %v89_v27, %v41_v0  ;;  %v92_v29 = vstv %s141_s3 }
  0x21   :  { %v71_v30 = vmul.f32 %v70_v22, %v68_v25  ;;  %v82_v31 = vadd.f32 %v81_v23, %v79_v26  ;;  %v93_v32 = vmul.f32 %v92_v29, %v43_v1  ;;  %v96_v34 = vstv %s142_s4 }
  0x22   :  { %v100_v40 = vstv %s143_s5 }
  0x23   :  { %v72_v35 = vadd.f32 %v71_v30, %v57_v24  ;;  %v83_v36 = vmax.f32 %v82_v31, 0.0  ;;  %v94_v37 = vadd.f32 %v93_v32, %v90_v28  ;;  %v104_v45 = vstv %s144_s6 }
  0x25   :  { %v86_v38 = vmul.f32 %v85_v33, %v83_v36  ;;  %v97_v39 = vadd.f32 %v96_v34, %v94_v37 }
  0x27   :  { %v87_v41 = vadd.f32 %v86_v38, %v72_v35  ;;  %v98_v42 = vmax.f32 %v97_v39, 0.0 }
  0x29   :  { %v101_v44 = vmul.f32 %v100_v40, %v98_v42 }
  0x2b   :  { %v102_v46 = vadd.f32 %v101_v44, %v87_v41 }
  0x2d   :  { %v105_v47 = vadd.f32 %v104_v45, %v102_v46 }
  0x2f   :  { %110 = vst.msk [vmem:[#allocation7] sm:$0x3] %vm108_vm0, %v105_v47 }
  0x30   :  { %121 = dma.vmem_to_hbm [thread:$0]  %s117_s8, 32, %s119_s11, [#allocation4]  }
  0x31   :  { %214 = dma.done.wait [#allocation4], 32  }
  0x32   :  { %215 = vsyncadd [#allocation4], 4294967264 }
  0x33   :  { %126 = vsyncpa [#allocation3], 1 }
  0x34   :  { %127 = vsyncpa [#allocation4], 1 }
  0x35   :  { %128 = vsyncpa [#allocation5], 1 }

</bundles_post_ra>
